<compile_context>
chip_gen: v6e
topology: v6e:2x2x1
jax: 0.10.0
libtpu: 0.0.40
codegen_flags: <defaults>
</compile_context>

<pallas_src>
import jax
import jax.numpy as jnp
import numpy as np
from jax.experimental import pallas as pl
from jax.experimental.pallas import tpu as pltpu

NUM_HEADS = 4  # (logits, xs, xm, xl)


def _dino_loss_kernel(scal_ref, stu_ref, t_ori_ref, t_flip_ref, center_ref,
                      loss_ref, new_center_ref):
    # scal_ref (SMEM f32[10]):
    #   [0] 1/teacher_temp  [1] lam_mix   [2] 1-lam_mix  [3] 1/student_temp
    #   [4] center_momentum [5] 1/B       [6:10] loss_lamdb (per head)
    h = pl.program_id(0)            # head index
    j = pl.program_id(1)            # batch-tile index
    nj = pl.num_programs(1)

    inv_temp = scal_ref[0]
    lam = scal_ref[1]
    one_minus_lam = scal_ref[2]
    inv_stemp = scal_ref[3]
    momentum = scal_ref[4]
    inv_b = scal_ref[5]
    lamd = scal_ref[6 + h]

    center = center_ref[...].astype(jnp.float32)             # (1, D)

    @pl.when((h == 0) & (j == 0))
    def _init():
        loss_ref[0] = jnp.float32(0.0)
        new_center_ref[...] = jnp.zeros_like(new_center_ref)

    def teacher_softmax(x):
        # softmax((x - center) * (1/temp)) with one reciprocal per row.
        z = (x - center) * inv_temp
        z = z - jnp.max(z, axis=-1, keepdims=True)
        e = jnp.exp(z)
        return e * pl.reciprocal(jnp.sum(e, axis=-1, keepdims=True))

    p_ori = teacher_softmax(t_ori_ref[...].astype(jnp.float32))   # (TB, D)
    p_flip = teacher_softmax(t_flip_ref[...].astype(jnp.float32))
    t = lam * p_ori + one_minus_lam * p_flip                      # mixed targets

    # Student: ce_row = logsumexp(s) - sum(t * s)   (valid since sum(t) == 1)
    s = stu_ref[...].astype(jnp.float32) * inv_stemp
    smax = jnp.max(s, axis=-1, keepdims=True)
    lse = smax + jnp.log(jnp.sum(jnp.exp(s - smax), axis=-1, keepdims=True))
    ce_rows = lse - jnp.sum(t * s, axis=-1, keepdims=True)        # (TB, 1)
    loss_ref[0] += lamd * inv_b * jnp.sum(ce_rows)

    # Center update uses only the head-0 mixed teacher distribution.
    @pl.when(h == 0)
    def _acc_center():
        new_center_ref[...] += jnp.sum(t, axis=0, keepdims=True)

    @pl.when((h == 0) & (j == nj - 1))
    def _finalize_center():
        new_center_ref[...] = (center * momentum
                               + new_center_ref[...] * ((1.0 - momentum) * inv_b))


def dino_loss_pallas(student_stack, lam_mix, teacher_ori_stack,
                     teacher_flip_stack, center, epoch,
                     teacher_temp_schedule, *, student_temp=0.1,
                     center_momentum=0.9, loss_lamdb=(1.0, 1.0, 1.0, 1.0),
                     batch_tile=None, vmem_limit_bytes=None):
    """Returns (total_loss, new_center)."""
    nh, B, D = student_stack.shape
    assert nh == NUM_HEADS and len(loss_lamdb) == NUM_HEADS
    assert D % 128 == 0, "pad out_dim to a multiple of 128 (lane-dense layout)"
    if batch_tile is None:
        batch_tile = B if B <= 256 else 256
    assert B % batch_tile == 0
    assert batch_tile == B or batch_tile % 8 == 0
    num_tiles = B // batch_tile

    temp = jnp.asarray(teacher_temp_schedule, jnp.float32)[epoch]
    lam = jnp.asarray(lam_mix, jnp.float32)
    scalars = jnp.concatenate([
        jnp.stack([1.0 / temp,
                   lam,
                   1.0 - lam,
                   jnp.float32(1.0 / student_temp),
                   jnp.float32(center_momentum),
                   jnp.float32(1.0 / B)]),
        jnp.asarray(loss_lamdb, jnp.float32),
    ]).astype(jnp.float32)

    grid_spec = pltpu.PrefetchScalarGridSpec(
        num_scalar_prefetch=1,
        grid=(NUM_HEADS, num_tiles),
        in_specs=[
            pl.BlockSpec((None, batch_tile, D), lambda h, j, s: (h, j, 0)),  # student
            pl.BlockSpec((None, batch_tile, D), lambda h, j, s: (h, j, 0)),  # teacher ori
            pl.BlockSpec((None, batch_tile, D), lambda h, j, s: (h, j, 0)),  # teacher flip
            pl.BlockSpec((1, D), lambda h, j, s: (0, 0)),                    # center (resident)
        ],
        out_specs=(
            pl.BlockSpec(memory_space=pltpu.MemorySpace.SMEM),               # scalar loss
            pl.BlockSpec((1, D), lambda h, j, s: (0, 0)),                    # new center
        ),
    )

    loss, new_center = pl.pallas_call(
        _dino_loss_kernel,
        grid_spec=grid_spec,
        out_shape=(jax.ShapeDtypeStruct((1,), jnp.float32),
                   jax.ShapeDtypeStruct((1, D), jnp.float32)),
        compiler_params=pltpu.CompilerParams(
            dimension_semantics=("arbitrary", "arbitrary"),
            vmem_limit_bytes=vmem_limit_bytes),
    )(scalars, student_stack, teacher_ori_stack, teacher_flip_stack, center)
    return loss[0], new_center


def _reference(student_stack, lam_mix, t_ori, t_flip, center, temp,
               student_temp, momentum, lamdbs):
    """Pure-JAX reference mirroring the PyTorch forward (for verification)."""
    def tsoft(x):
        return jax.nn.softmax((x - center) / temp, axis=-1)
    total = jnp.float32(0.0)
    t0 = None
    for h in range(NUM_HEADS):
        t = lam_mix * tsoft(t_ori[h]) + (1.0 - lam_mix) * tsoft(t_flip[h])
        if h == 0:
            t0 = t
        logp = jax.nn.log_softmax(student_stack[h] / student_temp, axis=-1)
        total = total + lamdbs[h] * jnp.mean(jnp.sum(-t * logp, axis=-1))
    B = student_stack.shape[1]
    bc = jnp.sum(t0, axis=0, keepdims=True) / B
    new_center = center * momentum + bc * (1.0 - momentum)
    return total, new_center


if __name__ == "__main__":
    # DINOLoss init parameters (deterministic, in-script).
    out_dim = 128          # lane-dense (multiple of 128) per perf review
    batch = 16             # multiple of 8
    batch_tile = 8
    warmup_teacher_temp, teacher_temp = 0.04, 0.07
    warmup_teacher_temp_epochs, nepochs = 5, 10
    student_temp, center_momentum = 0.1, 0.9
    loss_lamdb = (1.0, 0.5, 0.5, 0.5)   # args.MultiLoss = True
    epoch = 3
    teacher_temp_schedule = np.concatenate((
        np.linspace(warmup_teacher_temp, teacher_temp, warmup_teacher_temp_epochs),
        np.ones(nepochs - warmup_teacher_temp_epochs) * teacher_temp))

    key = jax.random.PRNGKey(0)
    ks = jax.random.split(key, 4)
    student_stack = jax.random.normal(ks[0], (NUM_HEADS, batch, out_dim), jnp.float32)
    teacher_ori = jax.random.normal(ks[1], (NUM_HEADS, batch, out_dim), jnp.float32)
    teacher_flip = jax.random.normal(ks[2], (NUM_HEADS, batch, out_dim), jnp.float32)
    center = jnp.zeros((1, out_dim), jnp.float32)   # register_buffer('center', zeros)
    lam_mix = 0.7

    loss, new_center = dino_loss_pallas(
        student_stack, lam_mix, teacher_ori, teacher_flip, center, epoch,
        teacher_temp_schedule, student_temp=student_temp,
        center_momentum=center_momentum, loss_lamdb=loss_lamdb,
        batch_tile=batch_tile)
    loss = jax.block_until_ready(loss)
    new_center = jax.block_until_ready(new_center)

    ref_loss, ref_center = _reference(
        student_stack, lam_mix, teacher_ori, teacher_flip, center,
        float(teacher_temp_schedule[epoch]), student_temp, center_momentum,
        loss_lamdb)

    assert np.allclose(np.asarray(loss), np.asarray(ref_loss),
                       rtol=1e-4, atol=1e-4), (loss, ref_loss)
    assert np.allclose(np.asarray(new_center), np.asarray(ref_center),
                       rtol=1e-4, atol=1e-6)
    print("KERNEL_OK")
</pallas_src>

<mosaic_0001>
module attributes {stable_mosaic.version = 11 : i64} {
  func.func @_dino_loss_kernel(%arg0: i32, %arg1: i32, %arg2: memref<10xf32, #tpu.memory_space<smem>>, %arg3: memref<1x8x128xf32, #tpu.memory_space<vmem>>, %arg4: memref<1x8x128xf32, #tpu.memory_space<vmem>>, %arg5: memref<1x8x128xf32, #tpu.memory_space<vmem>>, %arg6: memref<1x128xf32, #tpu.memory_space<vmem>>, %arg7: memref<1xf32, #tpu.memory_space<smem>>, %arg8: memref<1x128xf32, #tpu.memory_space<vmem>>) attributes {dimension_semantics = [#tpu.dimension_semantics<arbitrary>, #tpu.dimension_semantics<arbitrary>], iteration_bounds = array<i64: 4, 2>, scalar_prefetch = 1 : i64, scratch_operands = 0 : i64, tpu.core_type = #tpu.core_type<tc>, window_params = [{transform_indices = @transform_0, window_bounds = array<i64: 1, 8, 128>}, {transform_indices = @transform_1, window_bounds = array<i64: 1, 8, 128>}, {transform_indices = @transform_2, window_bounds = array<i64: 1, 8, 128>}, {pipeline_mode = #tpu.pipeline_mode<synchronous>, transform_indices = @transform_3, window_bounds = array<i64: 1, 128>}, {transform_indices = @transform_4, window_bounds = array<i64: 1>}, {pipeline_mode = #tpu.pipeline_mode<synchronous>, transform_indices = @transform_5, window_bounds = array<i64: 1, 128>}]} {
    %c0 = arith.constant 0 : index
    %0 = memref.load %arg2[%c0] : memref<10xf32, #tpu.memory_space<smem>>
    %c1 = arith.constant 1 : index
    %1 = memref.load %arg2[%c1] : memref<10xf32, #tpu.memory_space<smem>>
    %c2 = arith.constant 2 : index
    %2 = memref.load %arg2[%c2] : memref<10xf32, #tpu.memory_space<smem>>
    %c3 = arith.constant 3 : index
    %3 = memref.load %arg2[%c3] : memref<10xf32, #tpu.memory_space<smem>>
    %c4 = arith.constant 4 : index
    %4 = memref.load %arg2[%c4] : memref<10xf32, #tpu.memory_space<smem>>
    %c5 = arith.constant 5 : index
    %5 = memref.load %arg2[%c5] : memref<10xf32, #tpu.memory_space<smem>>
    %c6_i32 = arith.constant 6 : i32
    %6 = arith.addi %c6_i32, %arg0 : i32
    %7 = arith.index_cast %6 : i32 to index
    %8 = memref.load %arg2[%7] : memref<10xf32, #tpu.memory_space<smem>>
    %c0_0 = arith.constant 0 : index
    %c0_1 = arith.constant 0 : index
    %9 = vector.load %arg6[%c0_0, %c0_1] : memref<1x128xf32, #tpu.memory_space<vmem>>, vector<1x128xf32>
    %c0_i32 = arith.constant 0 : i32
    %10 = arith.cmpi eq, %arg0, %c0_i32 : i32
    %c0_i32_2 = arith.constant 0 : i32
    %11 = arith.cmpi eq, %arg1, %c0_i32_2 : i32
    %12 = arith.andi %10, %11 : i1
    %13 = arith.extui %12 : i1 to i32
    %c0_i32_3 = arith.constant 0 : i32
    %14 = arith.cmpi ne, %13, %c0_i32_3 : i32
    scf.if %14 {
      %cst_26 = arith.constant 0.000000e+00 : f32
      %c0_27 = arith.constant 0 : index
      %86 = memref.load %arg7[%c0_27] : memref<1xf32, #tpu.memory_space<smem>>
      memref.store %cst_26, %arg7[%c0_27] : memref<1xf32, #tpu.memory_space<smem>>
      %cst_28 = arith.constant 0.000000e+00 : f32
      %87 = vector.broadcast %cst_28 : f32 to vector<1x128xf32>
      %c0_29 = arith.constant 0 : index
      %c0_30 = arith.constant 0 : index
      %88 = vector.load %arg8[%c0_29, %c0_30] : memref<1x128xf32, #tpu.memory_space<vmem>>, vector<1x128xf32>
      tpu.vector_store %arg8[%c0_29, %c0_30], %87 {strides = array<i32>} : memref<1x128xf32, #tpu.memory_space<vmem>>, vector<1x128xf32>,
    } else {
    }
    %c0_4 = arith.constant 0 : index
    %c0_5 = arith.constant 0 : index
    %c0_6 = arith.constant 0 : index
    %15 = vector.load %arg4[%c0_4, %c0_5, %c0_6] : memref<1x8x128xf32, #tpu.memory_space<vmem>>, vector<1x8x128xf32>
    %16 = vector.shape_cast %15 : vector<1x8x128xf32> to vector<8x128xf32>
    %17 = vector.broadcast %9 : vector<1x128xf32> to vector<8x128xf32>
    %18 = arith.subf %16, %17 : vector<8x128xf32>
    %19 = vector.broadcast %0 : f32 to vector<8x128xf32>
    %20 = arith.mulf %18, %19 : vector<8x128xf32>
    %cst = arith.constant dense<0xFF800000> : vector<8xf32>
    %21 = vector.multi_reduction <maximumf>, %20, %cst [1] : vector<8x128xf32> to vector<8xf32>
    %22 = vector.shape_cast %21 : vector<8xf32> to vector<8x1xf32>
    %23 = vector.broadcast %22 : vector<8x1xf32> to vector<8x128xf32>
    %24 = arith.subf %20, %23 : vector<8x128xf32>
    %25 = math.exp %24 : vector<8x128xf32>
    %cst_7 = arith.constant dense<0.000000e+00> : vector<8xf32>
    %26 = vector.multi_reduction <add>, %25, %cst_7 [1] : vector<8x128xf32> to vector<8xf32>
    %27 = vector.shape_cast %26 : vector<8xf32> to vector<8x1xf32>
    %28 = tpu.reciprocal %27 : vector<8x1xf32> -> vector<8x1xf32>
    %29 = vector.broadcast %28 : vector<8x1xf32> to vector<8x128xf32>
    %30 = arith.mulf %25, %29 : vector<8x128xf32>
    %c0_8 = arith.constant 0 : index
    %c0_9 = arith.constant 0 : index
    %c0_10 = arith.constant 0 : index
    %31 = vector.load %arg5[%c0_8, %c0_9, %c0_10] : memref<1x8x128xf32, #tpu.memory_space<vmem>>, vector<1x8x128xf32>
    %32 = vector.shape_cast %31 : vector<1x8x128xf32> to vector<8x128xf32>
    %33 = vector.broadcast %9 : vector<1x128xf32> to vector<8x128xf32>
    %34 = arith.subf %32, %33 : vector<8x128xf32>
    %35 = vector.broadcast %0 : f32 to vector<8x128xf32>
    %36 = arith.mulf %34, %35 : vector<8x128xf32>
    %cst_11 = arith.constant dense<0xFF800000> : vector<8xf32>
    %37 = vector.multi_reduction <maximumf>, %36, %cst_11 [1] : vector<8x128xf32> to vector<8xf32>
    %38 = vector.shape_cast %37 : vector<8xf32> to vector<8x1xf32>
    %39 = vector.broadcast %38 : vector<8x1xf32> to vector<8x128xf32>
    %40 = arith.subf %36, %39 : vector<8x128xf32>
    %41 = math.exp %40 : vector<8x128xf32>
    %cst_12 = arith.constant dense<0.000000e+00> : vector<8xf32>
    %42 = vector.multi_reduction <add>, %41, %cst_12 [1] : vector<8x128xf32> to vector<8xf32>
    %43 = vector.shape_cast %42 : vector<8xf32> to vector<8x1xf32>
    %44 = tpu.reciprocal %43 : vector<8x1xf32> -> vector<8x1xf32>
    %45 = vector.broadcast %44 : vector<8x1xf32> to vector<8x128xf32>
    %46 = arith.mulf %41, %45 : vector<8x128xf32>
    %47 = vector.broadcast %1 : f32 to vector<8x128xf32>
    %48 = arith.mulf %47, %30 : vector<8x128xf32>
    %49 = vector.broadcast %2 : f32 to vector<8x128xf32>
    %50 = arith.mulf %49, %46 : vector<8x128xf32>
    %51 = arith.addf %48, %50 : vector<8x128xf32>
    %c0_13 = arith.constant 0 : index
    %c0_14 = arith.constant 0 : index
    %c0_15 = arith.constant 0 : index
    %52 = vector.load %arg3[%c0_13, %c0_14, %c0_15] : memref<1x8x128xf32, #tpu.memory_space<vmem>>, vector<1x8x128xf32>
    %53 = vector.shape_cast %52 : vector<1x8x128xf32> to vector<8x128xf32>
    %54 = vector.broadcast %3 : f32 to vector<8x128xf32>
    %55 = arith.mulf %53, %54 : vector<8x128xf32>
    %cst_16 = arith.constant dense<0xFF800000> : vector<8xf32>
    %56 = vector.multi_reduction <maximumf>, %55, %cst_16 [1] : vector<8x128xf32> to vector<8xf32>
    %57 = vector.shape_cast %56 : vector<8xf32> to vector<8x1xf32>
    %58 = vector.broadcast %57 : vector<8x1xf32> to vector<8x128xf32>
    %59 = arith.subf %55, %58 : vector<8x128xf32>
    %60 = math.exp %59 : vector<8x128xf32>
    %cst_17 = arith.constant dense<0.000000e+00> : vector<8xf32>
    %61 = vector.multi_reduction <add>, %60, %cst_17 [1] : vector<8x128xf32> to vector<8xf32>
    %62 = vector.shape_cast %61 : vector<8xf32> to vector<8x1xf32>
    %63 = math.log %62 : vector<8x1xf32>
    %64 = arith.addf %57, %63 : vector<8x1xf32>
    %65 = arith.mulf %51, %55 : vector<8x128xf32>
    %cst_18 = arith.constant dense<0.000000e+00> : vector<8xf32>
    %66 = vector.multi_reduction <add>, %65, %cst_18 [1] : vector<8x128xf32> to vector<8xf32>
    %67 = vector.shape_cast %66 : vector<8xf32> to vector<8x1xf32>
    %68 = arith.subf %64, %67 : vector<8x1xf32>
    %c0_19 = arith.constant 0 : index
    %69 = memref.load %arg7[%c0_19] : memref<1xf32, #tpu.memory_space<smem>>
    %70 = arith.mulf %8, %5 : f32
    %71 = vector.shape_cast %68 : vector<8x1xf32> to vector<1x8x1xf32>
    %cst_20 = arith.constant dense<0.000000e+00> : vector<1xf32>
    %72 = vector.multi_reduction <add>, %71, %cst_20 [1, 2] : vector<1x8x1xf32> to vector<1xf32>
    %73 = vector.shape_cast %72 : vector<1xf32> to vector<1x1x1xf32>
    %74 = vector.extract %73[0, 0, 0] : f32 from vector<1x1x1xf32>
    %75 = arith.mulf %70, %74 : f32
    %76 = arith.addf %69, %75 : f32
    %c0_21 = arith.constant 0 : index
    %77 = memref.load %arg7[%c0_21] : memref<1xf32, #tpu.memory_space<smem>>
    memref.store %76, %arg7[%c0_21] : memref<1xf32, #tpu.memory_space<smem>>
    %c0_i32_22 = arith.constant 0 : i32
    %78 = arith.cmpi eq, %arg0, %c0_i32_22 : i32
    %79 = arith.extui %78 : i1 to i32
    %c0_i32_23 = arith.constant 0 : i32
    %80 = arith.cmpi ne, %79, %c0_i32_23 : i32
    scf.if %80 {
      %c0_26 = arith.constant 0 : index
      %c0_27 = arith.constant 0 : index
      %86 = vector.load %arg8[%c0_26, %c0_27] : memref<1x128xf32, #tpu.memory_space<vmem>>, vector<1x128xf32>
      %cst_28 = arith.constant dense<0.000000e+00> : vector<128xf32>
      %87 = vector.multi_reduction <add>, %51, %cst_28 [0] : vector<8x128xf32> to vector<128xf32>
      %88 = vector.shape_cast %87 : vector<128xf32> to vector<1x128xf32>
      %89 = arith.addf %86, %88 : vector<1x128xf32>
      %c0_29 = arith.constant 0 : index
      %c0_30 = arith.constant 0 : index
      %90 = vector.load %arg8[%c0_29, %c0_30] : memref<1x128xf32, #tpu.memory_space<vmem>>, vector<1x128xf32>
      tpu.vector_store %arg8[%c0_29, %c0_30], %89 {strides = array<i32>} : memref<1x128xf32, #tpu.memory_space<vmem>>, vector<1x128xf32>,
    } else {
    }
    %c0_i32_24 = arith.constant 0 : i32
    %81 = arith.cmpi eq, %arg0, %c0_i32_24 : i32
    %c1_i32 = arith.constant 1 : i32
    %82 = arith.cmpi eq, %arg1, %c1_i32 : i32
    %83 = arith.andi %81, %82 : i1
    %84 = arith.extui %83 : i1 to i32
    %c0_i32_25 = arith.constant 0 : i32
    %85 = arith.cmpi ne, %84, %c0_i32_25 : i32
    scf.if %85 {
      %86 = vector.broadcast %4 : f32 to vector<1x128xf32>
      %87 = arith.mulf %9, %86 : vector<1x128xf32>
      %c0_26 = arith.constant 0 : index
      %c0_27 = arith.constant 0 : index
      %88 = vector.load %arg8[%c0_26, %c0_27] : memref<1x128xf32, #tpu.memory_space<vmem>>, vector<1x128xf32>
      %cst_28 = arith.constant 1.000000e+00 : f32
      %89 = arith.subf %cst_28, %4 : f32
      %90 = arith.mulf %89, %5 : f32
      %91 = vector.broadcast %90 : f32 to vector<1x128xf32>
      %92 = arith.mulf %88, %91 : vector<1x128xf32>
      %93 = arith.addf %87, %92 : vector<1x128xf32>
      %c0_29 = arith.constant 0 : index
      %c0_30 = arith.constant 0 : index
      %94 = vector.load %arg8[%c0_29, %c0_30] : memref<1x128xf32, #tpu.memory_space<vmem>>, vector<1x128xf32>
      tpu.vector_store %arg8[%c0_29, %c0_30], %93 {strides = array<i32>} : memref<1x128xf32, #tpu.memory_space<vmem>>, vector<1x128xf32>,
    } else {
    }
    return
  }
  func.func @transform_0(%arg0: i32, %arg1: i32, %arg2: memref<10xf32, #tpu.memory_space<smem>>) -> (i32, i32, i32) {
    %c0_i32 = arith.constant 0 : i32
    %c0_i32_0 = arith.constant 0 : i32
    return %arg0, %arg1, %c0_i32 : i32, i32, i32
  }
  func.func @transform_1(%arg0: i32, %arg1: i32, %arg2: memref<10xf32, #tpu.memory_space<smem>>) -> (i32, i32, i32) {
    %c0_i32 = arith.constant 0 : i32
    %c0_i32_0 = arith.constant 0 : i32
    return %arg0, %arg1, %c0_i32 : i32, i32, i32
  }
  func.func @transform_2(%arg0: i32, %arg1: i32, %arg2: memref<10xf32, #tpu.memory_space<smem>>) -> (i32, i32, i32) {
    %c0_i32 = arith.constant 0 : i32
    %c0_i32_0 = arith.constant 0 : i32
    return %arg0, %arg1, %c0_i32 : i32, i32, i32
  }
  func.func @transform_3(%arg0: i32, %arg1: i32, %arg2: memref<10xf32, #tpu.memory_space<smem>>) -> (i32, i32) {
    %c0_i32 = arith.constant 0 : i32
    %c0_i32_0 = arith.constant 0 : i32
    %c0_i32_1 = arith.constant 0 : i32
    return %c0_i32, %c0_i32_0 : i32, i32
  }
  func.func @transform_4(%arg0: i32, %arg1: i32, %arg2: memref<10xf32, #tpu.memory_space<smem>>) -> i32 {
    %c0_i32 = arith.constant 0 : i32
    %c0_i32_0 = arith.constant 0 : i32
    return %c0_i32 : i32
  }
  func.func @transform_5(%arg0: i32, %arg1: i32, %arg2: memref<10xf32, #tpu.memory_space<smem>>) -> (i32, i32) {
    %c0_i32 = arith.constant 0 : i32
    %c0_i32_0 = arith.constant 0 : i32
    %c0_i32_1 = arith.constant 0 : i32
    return %c0_i32, %c0_i32_0 : i32, i32
  }
}

</mosaic_0001>

<bundles_post_ra>
// kernel: tpu_custom_call.1
= control target key start
LH: loop header
LB: loop body
LE: loop exit
PB: predicated region body
PF: predicated region fallthrough
CT: control target
= control target key end

     0   :  { %s930_s21 = smov [#allocation3]   ;;  %s1200_s0 = inlined_call_operand.hbm [shape: f32[10], index: 0, kind: input, shape index: {}]   ;;  %s1201_s1 = inlined_call_operand.hbm [shape: f32[4,16,128], index: 1, kind: input, shape index: {}]   ;;  %s1202_s2 = inlined_call_operand.hbm [shape: f32[4,16,128], index: 2, kind: input, shape index: {}]   ;;  %s1203_s3 = inlined_call_operand.hbm [shape: f32[4,16,128], index: 3, kind: input, shape index: {}]   ;;  %s1204_s4 = inlined_call_operand.vmem [shape: f32[1,128], index: 4, kind: input, shape index: {}]   ;;  %s1205_s5 = inlined_call_operand.hbm [shape: f32[1], index: 5, kind: output, shape index: {0}]   ;;  %s1206_s6 = inlined_call_operand.hbm [shape: f32[1,128], index: 6, kind: output, shape index: {1}]  }
   0x1   :  { %1210 = sst [smem:[#allocation20_spill]] %s1201_s1 }
   0x2   :  { %1211 = sst [smem:[#allocation21_spill]] %s1202_s2 }
   0x3   :  { %13 = dma.hbm_to_smem %s1200_s0, 16, %s930_s21, [#allocation2] }
   0x4   :  { %880 = dma.done.wait [#allocation2], 16 }
   0x5   :  { %881 = vsyncadd [#allocation2], 4294967280 }
   0x6   :  { %15 = sfence }
   0x7   :  { %16 = vsyncpa [#allocation5], 0 }
   0x8   :  { %18 = vsyncpa [#allocation5 + $0x1], 0 }
   0x9   :  { %19 = vsyncpa [#allocation9], 0 }
   0xa   :  { %21 = vsyncpa [#allocation9 + $0x1], 0 }
   0xb   :  { %22 = vsyncpa [#allocation7], 0 }
   0xc   :  { %23 = vsyncpa [#allocation6], 0  ;;  %s976_s24 = smov 0   ;;  %s978_s25 = smov 0  }
   0xd   :  { %s980_s26 = smov 0   ;;  %s982_s27 = smov 0  }
   0xe   :  { %s984_s28 = smov 0   ;;  %s986_s0 = smov 0  }
   0xf   :  { %s988_s29 = smov 0   ;;  %s990_s30 = smov 0  }
  0x10 LB: > { %s1015_s7 = sadd.s32 4294967295, %s928_s30   ;;  %s38_s8 = sadd.s32 1, %s920_s0  ;;  %s928_s30 = sphi %s990_s30, %s29_s30   ;;  %s924_s29 = sphi %s988_s29, %s1228_s29   ;;  %s920_s0 = sphi %s986_s0, %s1227_s0   ;;  %s916_s28 = sphi %s984_s28, %s1226_s28   ;;  %s912_s27 = sphi %s982_s27, %s1225_s27   ;;  %s908_s26 = sphi %s980_s26, %s1224_s26   ;;  %s904_s25 = sphi %s978_s25, %s1223_s25   ;;  %s900_s24 = sphi %s976_s24, %s1222_s24  }
  0x11   : > { %p39_p0 = scmp.ge.s32.totalorder %s38_s8, 2  ;;  %s41_s9 = sadd.s32 1, %s924_s29 }
  0x12   : > { %s50_s10 = sadd.s32 1, %s908_s26  ;;  %p57_p1 = scmp.ne.s32.totalorder %s908_s26, %s904_s25 }
  0x13   : > { %s1230_s8 = smov (%p39_p0, %s38_s8), 0  ;;  %s1232_s9 = smov (!%p39_p0, %s41_s9), %s924_s29 }
  0x14   : > { %1212 = sst [smem:[#allocation18_spill]] %s1230_s8  ;;  %s46_s11 = ssub.s32 %s920_s0, %s1230_s8 }
  0x15   : > { %p58_p2 = scmp.eq.s32.totalorder %s928_s30, 0  ;;  %p43_p3 = scmp.ge.s32.totalorder %s1232_s9, 4 }
  0x16   : > { %p63_p4 = scmp.ne.s32.totalorder %s904_s25, %s900_s24  ;;  %p64_p6 = scmp.eq.s32.totalorder %s1015_s7, 0 }
  0x17   : > { %p59_p5 = por %p58_p2, %p57_p1  ;;  %s1234_s9 = smov (%p43_p3, %s1232_s9), 0 }
  0x18   : > { %1213 = sst [smem:[#allocation19_spill]] %s1234_s9  ;;  %p1032_p7 = por %p64_p6, %p63_p4 }
  0x19   : > { %s45_s13 = ssub.s32 %s924_s29, %s1234_s9  ;;  %p636_p8 = scmp.lt.s32.totalorder %s928_s30, 8 }
  0x1a   : > { %s47_s14 = sor.u32 %s46_s11, %s45_s13  ;;  %s1207_s15 = sand.u32 1, %s908_s26  }
  0x1b   : > { %p48_p9 = scmp.eq.s32.totalorder %s47_s14, 0  ;;  %s1042_s16 = sshll.u32 %s1207_s15, 3 }
  0x1c   : > { %s586_s17 = sshll.u32 %s924_s29, 1  ;;  %p1045_p10 = pnand %p636_p8, %p59_p5 }
  0x1d   : > { %s1050_s19 = scalar_select %p48_p9, %s908_s26, %s50_s10  }
  0x1e   : > { %s218_s20 = sadd.s32 %s920_s0, %s586_s17  ;;  %s229_s22 = sand.u32 1, %s928_s30  }
  0x1f   : > { %s1053_s21 = sshll.u32 %s218_s20, 7  ;;  %s1216_s2 = sld [smem:[#allocation21_spill]] }
  0x20   : > { %s233_s13 = scalar_lea.vmem [#allocation8], %s1042_s16  ;;  %p594_p11 = scmp.ge.s32.totalorder %s928_s30, 1 }
  0x21   : > { %s242_s14 = sshll.u32 %s233_s13, 4  ;;  %s1062_s15 = scalar_lea.sflag [#allocation9], %s229_s22  ;;  %s243_s14 = int_to_ptr.vmem [resolvable:$true] %s242_s14 }
  0x22   : > { %p732_p12 = pneg %p1045_p10  ;;  %s743_s9 = scalar_lea.vmem %s243_s14, 128 }
  0x23   : > { %p744_p13 = scmp.ne.s32.totalorder %s243_s14, %s743_s9  ;;  %s931_s10 = smov [#allocation8]  }
  0x24   : > { %s748_s17 = sshll.u32 %s931_s10, 4  ;;  %s749_s17 = int_to_ptr.vmem [resolvable:$false] %s748_s17 }
  0x25   : > { %s240_s11 = scalar_lea.hbm %s1216_s2, %s1053_s21  ;;  %p746_p0 = pnand %p744_p13, %p732_p12 }
  0x26   : > { %s750_s20 = scalar_lea.vmem %s749_s17, 256  ;;  %p751_p2 = scmp.lt.s32.totalorder %s243_s14, %s749_s17 }
  0x27   : > { %p747_p1 = pneg %p746_p0  ;;  %p752_p3 = scmp.lt.s32.totalorder %s750_s20, %s743_s9 }
  0x29   : > { %p753_p4 = por %p752_p3, %p751_p2 }
  0x2b   : > { %p754_p5 = pnand %p753_p4, %p747_p1 }
  0x2d   : > { %757 = shalt.err (!%p754_p5)
}
  0x2e   : > { %632 = dma.hbm_to_vmem [thread:$0]  (!%p1045_p10), %s240_s11, 128, %s243_s14, %s1062_s15  }
  0x2f   : > { %p267_p6 = scmp.lt.s32.totalorder %s928_s30, 9  ;;  %s1218_s1 = sld [smem:[#allocation20_spill]] }
  0x30   : > { %s213_s13 = scalar_lea.vmem [#allocation4], %s1042_s16  ;;  %s1219_s17 = sand.u32 1, %s908_s26  }
  0x31   : > { %p1075_p8 = pnand %p594_p11, %p267_p6  ;;  %s222_s10 = sshll.u32 %s213_s13, 4  ;;  %s223_s10 = int_to_ptr.vmem [resolvable:$true] %s222_s10 }
  0x32   : > { %s210_s20 = scalar_lea.sflag [#allocation5], %s1219_s17  ;;  %s771_s2 = scalar_lea.vmem %s223_s10, 128 }
  0x33   : > { %p772_p9 = scmp.ne.s32.totalorder %s223_s10, %s771_s2  ;;  %s932_s11 = smov [#allocation4]  }
  0x34   : > { %s776_s14 = sshll.u32 %s932_s11, 4  ;;  %s777_s14 = int_to_ptr.vmem [resolvable:$false] %s776_s14 }
  0x35   : > { %s220_s24 = scalar_lea.hbm %s1218_s1, %s1053_s21  ;;  %p774_p13 = pnand %p772_p9, %p732_p12 }
  0x36   : > { %s778_s8 = scalar_lea.vmem %s777_s14, 256  ;;  %p779_p11 = scmp.lt.s32.totalorder %s223_s10, %s777_s14 }
  0x37   : > { %p775_p0 = pneg %p774_p13  ;;  %p780_p1 = scmp.lt.s32.totalorder %s778_s8, %s771_s2 }
  0x39   : > { %p781_p2 = por %p780_p1, %p779_p11 }
  0x3b   : > { %p782_p3 = pnand %p781_p2, %p775_p0 }
  0x3d   : > { %785 = shalt.err (!%p782_p3)
}
  0x3e   : > { %629 = dma.hbm_to_vmem [thread:$0]  (!%p1045_p10), %s220_s24, 128, %s223_s10, %s210_s20  }
  0x3f   : > { %s260_s13 = scalar_lea.hbm %s1203_s3, %s1053_s21  ;;  %s253_s17 = scalar_lea.vmem [#allocation10], %s1042_s16 }
  0x40   : > { %s262_s1 = sshll.u32 %s253_s17, 4  ;;  %s933_s2 = smov [#allocation10]   ;;  %s263_s1 = int_to_ptr.vmem [resolvable:$true] %s262_s1 }
  0x41   : > { %s799_s11 = scalar_lea.vmem %s263_s1, 128  ;;  %s804_s8 = sshll.u32 %s933_s2, 4  ;;  %s805_s8 = int_to_ptr.vmem [resolvable:$false] %s804_s8 }
  0x42   : > { %p800_p4 = scmp.ne.s32.totalorder %s263_s1, %s799_s11  ;;  %s806_s14 = scalar_lea.vmem %s805_s8, 256 }
  0x43   : > { %p807_p9 = scmp.lt.s32.totalorder %s263_s1, %s805_s8  ;;  %p808_p13 = scmp.lt.s32.totalorder %s806_s14, %s799_s11 }
  0x44   : > { %p802_p5 = pnand %p800_p4, %p732_p12 }
  0x45   : > { %p809_p0 = por %p808_p13, %p807_p9 }
  0x46   : > { %p803_p6 = pneg %p802_p5 }
  0x48   : > { %p810_p11 = pnand %p809_p0, %p803_p6 }
  0x4a   : > { %813 = shalt.err (!%p810_p11)
}
  0x4b   : > { %635 = dma.hbm_to_vmem [thread:$0]  (!%p1045_p10), %s260_s13, 128, %s263_s1, %s1062_s15  }
  0x4c   : > { %271 = sbr.rel (%p1075_p8) target bundleno = 826 (0x33a), region = 36  ;;  %s273_s16 = sand.u32 (!%p1075_p8), 1, %s904_s25  }
  0x4d   : > { %s1105_s21 = sshll.u32 (!%p1075_p8), %s273_s16, 3  ;;  %s274_s24 = scalar_lea.sflag (!%p1075_p8), [#allocation5], %s273_s16 }
  0x4e   : > { %s277_s10 = scalar_lea.vmem (!%p1075_p8), [#allocation4], %s1105_s21 }
  0x51   : > { %883 = dma.done.wait (%p1032_p7), %s274_s24, 128  }
  0x52   : > { %885 = vsyncadd (%p1032_p7), %s274_s24, 4294967168  ;;  %s282_s1 = sand.u32 1, %s1015_s7   ;;  %s286_s18 = scalar_lea.vmem [#allocation8], %s1105_s21 }
  0x53   : > { %s283_s15 = scalar_lea.sflag [#allocation9], %s282_s1 }
  0x54   : > { %887 = dma.done.wait (%p1032_p7), %s283_s15, 256  }
  0x55   : > { %889 = vsyncadd (%p1032_p7), %s283_s15, 4294967040  ;;  %s1118_s22 = sld [smem:[#allocation3]]  ;;  %p336_p10 = scmp.eq.s32.totalorder %s916_s28, 0  ;;  %v1138_v0 = vld [vmem:[%s1204_s4] sm:$0x1] }
  0x56   : > { %s1121_s20 = sld [smem:[#allocation3 + $0x1]]  ;;  %p337_p12 = scmp.eq.s32.totalorder %s912_s27, 0 }
  0x57   : > { %s1124_s9 = sld [smem:[#allocation3 + $0x2]]  ;;  %s333_s23 = sadd.s32 6, %s916_s28 }
  0x58   : > { %s600_s13 = sld [smem:[#allocation3 + $0x3]]  ;;  %p338_p8 = pnand %p337_p12, %p336_p10 }
  0x59   : > { %s1129_s17 = sld [smem:[#allocation3 + $0x4]]  ;;  %s295_s14 = scalar_lea.vmem [#allocation10], %s1105_s21 }
  0x5a   : > { %s1131_s12 = sld [smem:[#allocation3 + $0x5]]  ;;  %341 = sbr.rel (%p338_p8) target bundleno = 97 (0x61), region = 52 }
  0x5b   : > { %s1133_s11 = sld [smem:[#allocation3 + %s333_s23]]  ;;  %s934_s16 = smov (!%p338_p8), 0.0  }
  0x5c   : > { %343 = sst [smem:[#allocation11]] (!%p338_p8), %s934_s16 }
  0x5f   : > { %v935_v1 = vmov 0.0  }
  0x60   : > { %344 = vst [vmem:[#allocation12] sm:$0x1] %v935_v1 }
  0x61 PF: > { %v347_v2 = vlaneseq  ;;  %v381_v3 = vld [vmem:[%s277_s10] sm:$0xff]  ;;  %v382_v4 = vstv %s600_s13  ;;  %v345_v8 = vld [vmem:[%s286_s18] sm:$0xff]  ;;  %v353_v11 = vstv %s1118_s22  ;;  %vm400_vm0 = vcmask 7168   ;;  %s398_s21 = sld [smem:[#allocation11]]  ;;  %s399_s24 = smul.f32 %s1131_s12, %s1133_s11 }
  0x62   : > { %v383_v5 = vmul.f32 %v382_v4, %v381_v3  ;;  %v364_v9 = vld [vmem:[%s295_s14] sm:$0xff]  ;;  %v376_v33 = vstv %s1121_s20  ;;  %v378_v34 = vstv %s1124_s9  ;;  %p603_p7 = scmp.ne.s32.totalorder %s916_s28, 0 }
  0x63   : > { %v348_v6 = vshrl.u32 %v347_v2, 7 }
  0x64   : > { %384 = vmax.xlane.f32.xlu1 %v383_v5 }
  0x65   : > { %v349_v7 = vsub.s32 0, %v348_v6 }
  0x67   : > { %v350_v10 = vrot.slane %v1138_v0, %v349_v7 }
  0x69   : > { %v352_v12 = vsub.f32 %v345_v8, %v350_v10  ;;  %v365_v13 = vsub.f32 %v364_v9, %v350_v10 }
  0x6b   : > { %v354_v14 = vmul.f32 %v353_v11, %v352_v12  ;;  %v366_v15 = vmul.f32 %v365_v13, %v353_v11 }
  0x6d   : > { %355 = vmax.xlane.f32.xlu0 %v354_v14 }
  0x71   : > { %367 = vmax.xlane.f32.xlu0 %v366_v15 }
  0xed   : > { %v385_v16 = vpop.xlane.xlu1 %384 }
  0xee   : > { %v386_v17 = vsub.f32 %v383_v5, %v385_v16 }
  0xf0   : > { %v387_v21 = vmul.f32 1.442695, %v386_v17 }
  0xf6   : > { %v356_v18 = vpop.xlane.xlu0 %355 }
  0xf7   : > { %v357_v19 = vsub.f32 %v354_v14, %v356_v18 }
  0xf9   : > { %v358_v20 = vmul.f32 1.442695, %v357_v19 }
  0xfa   : > { %v368_v22 = vpop.xlane.xlu0 %367 }
  0xfb   : > { %710 = vpow2.f32 %v358_v20  ;;  %v369_v23 = vsub.f32 %v366_v15, %v368_v22 }
  0xfc   : > { %712 = vpow2.f32 %v387_v21 }
  0xfd   : > { %v370_v24 = vmul.f32 1.442695, %v369_v23 }
  0xff   : > { %714 = vpow2.f32 %v370_v24 }
 0x108   : > { %v711_v25 = vpop.eup %710 }
 0x109   : > { %360 = vadd.xlane.f32.xlu1 %v711_v25  ;;  %v713_v26 = vpop.eup %712 }
 0x10c   : > { %v715_v27 = vpop.eup %714 }
 0x10d   : > { %389 = vadd.xlane.f32.xlu1 %v713_v26  ;;  %372 = vadd.xlane.f32.xlu0 %v715_v27 }
 0x192   : > { %v361_v28 = vpop.xlane.xlu1 %360 }
 0x193   : > { %716 = vrcp.f32 %v361_v28 }
 0x196   : > { %v373_v29 = vpop.xlane.xlu0 %372  ;;  %v390_v40 = vpop.xlane.xlu1 %389 }
 0x197   : > { %718 = vrcp.f32 %v373_v29 }
 0x198   : > { %720 = vlog2.f32 %v390_v40 }
 0x1a0   : > { %v717_v30 = vpop.eup %716 }
 0x1a1   : > { %v363_v31 = vmul.f32 %v717_v30, %v711_v25 }
 0x1a3   : > { %v377_v36 = vmul.f32 %v376_v33, %v363_v31 }
 0x1a4   : > { %v719_v32 = vpop.eup %718 }
 0x1a5   : > { %v375_v35 = vmul.f32 %v719_v32, %v715_v27  ;;  %v721_v41 = vpop.eup %720 }
 0x1a6   : > { %v392_v42 = vmul.f32 0.6931472, %v721_v41 }
 0x1a7   : > { %v379_v37 = vmul.f32 %v378_v34, %v375_v35 }
 0x1a8   : > { %v393_v43 = vadd.f32 %v392_v42, %v385_v16 }
 0x1a9   : > { %v380_v38 = vadd.f32 %v379_v37, %v377_v36 }
 0x1ab   : > { %v394_v39 = vmul.f32 %v383_v5, %v380_v38 }
 0x1ad   : > { %395 = vadd.xlane.f32.xlu0 %v394_v39 }
 0x236   : > { %v396_v44 = vpop.xlane.xlu0 %395 }
 0x237   : > { %v397_v45 = vsub.f32 %v393_v43, %v396_v44 }
 0x239   : > { %v401_v46 = vsel %vm400_vm0, %v397_v45, 0.0 }
 0x23a   : > { %402 = vadd.xlane.f32.xlu1 %v401_v46 }
 0x2c3   : > { %v403_v47 = vpop.xlane.xlu1 %402 }
 0x2c4   : > { %v404_v48 = vrot.slane %v403_v47, 4 }
 0x2c6   : > { %v405_v49 = vadd.f32 %v404_v48, %v403_v47 }
 0x2c8   : > { %v406_v50 = vrot.slane %v405_v49, 2 }
 0x2ca   : > { %v407_v51 = vadd.f32 %v406_v50, %v405_v49 }
 0x2cc   : > { %v408_v52 = vrot.slane %v407_v51, 1 }
 0x2ce   : > { %v409_v53 = vadd.f32 %v408_v52, %v407_v51 }
 0x2d0   : > { %610 = vpush %v409_v53 }
 0x301   : > { %s611_s10 = spop %610 }
 0x302   : > { %s411_s1 = smul.f32 %s611_s10, %s399_s24 }
 0x303   : > { %417 = sbr.rel (%p603_p7) target bundleno = 791 (0x317), region = 56 }
 0x304   : > { %s412_s15 = sadd.f32 %s411_s1, %s398_s21 }
 0x306   : > { %414 = sst [smem:[#allocation11]] %s412_s15 }
 0x308   : > { %v419_v54 = vrot.slane %v380_v38, 4  ;;  %v418_v59 = vld [vmem:[#allocation12] sm:$0x1] }
 0x30a   : > { %v420_v55 = vadd.f32 %v419_v54, %v380_v38 }
 0x30c   : > { %v421_v56 = vrot.slane %v420_v55, 2 }
 0x30e   : > { %v422_v57 = vadd.f32 %v421_v56, %v420_v55 }
 0x310   : > { %v423_v58 = vrot.slane %v422_v57, 1 }
 0x312   : > { %v424_v60 = vadd.f32 %v423_v58, %v422_v57 }
 0x314   : > { %v425_v61 = vadd.f32 %v424_v60, %v418_v59 }
 0x316   : > { %426 = vst [vmem:[#allocation12] sm:$0x1] %v425_v61 }
 0x317 PF: > { %p427_p1 = scmp.eq.s32.totalorder %s912_s27, 1 }
 0x319   : > { %p428_p2 = pnand %p427_p1, %p336_p10 }
 0x31a   : > { %s435_s18 = ssub.f32 (!%p428_p2), 1.0, %s1129_s17 }
 0x31b   : > { %431 = sbr.rel (%p428_p2) target bundleno = 806 (0x326), region = 60 }
 0x31c   : > { %s436_s22 = smul.f32 (!%p428_p2), %s1131_s12, %s435_s18 }
 0x320   : > { %v432_v62 = vstv %s1129_s17  ;;  %v434_v63 = vld [vmem:[#allocation12] sm:$0x1]  ;;  %v437_v2 = vstv %s436_s22 }
 0x321   : > { %v433_v1 = vmul.f32 %v432_v62, %v1138_v0  ;;  %v438_v3 = vmul.f32 %v437_v2, %v434_v63 }
 0x323   : > { %v439_v4 = vadd.f32 %v438_v3, %v433_v1 }
 0x325   : > { %440 = vst [vmem:[#allocation12] sm:$0x1] %v439_v4 }
 0x326 PF: > { %p637_p3 = scmp.eq.s32.totalorder %s1015_s7, 7  ;;  %s936_s27 = smov [#allocation11]  }
 0x327   : > { %s937_s9 = smov [#allocation12]  }
 0x328   : > { %619 = dma.smem_to_hbm (%p637_p3), %s936_s27, 16, %s1205_s5, [#allocation7]  }
 0x329   : > { %s457_s23 = sshll.u32 %s937_s9, 4  ;;  %s458_s23 = int_to_ptr.vmem [resolvable:$true] %s457_s23 }
 0x32a   : > { %s824_s13 = scalar_lea.vmem %s458_s23, 16  ;;  %s830_s17 = scalar_lea.vmem %s458_s23, 32 }
 0x32b   : > { %p825_p4 = scmp.ne.s32.totalorder %s458_s23, %s824_s13  ;;  %p831_p9 = scmp.lt.s32.totalorder %s458_s23, %s458_s23 }
 0x32c   : > { %p832_p13 = scmp.lt.s32.totalorder %s830_s17, %s824_s13 }
 0x32d   : > { %p826_p5 = pnand %p825_p4, %p637_p3 }
 0x32e   : > { %p833_p0 = por %p832_p13, %p831_p9 }
 0x32f   : > { %p827_p6 = pneg %p826_p5 }
 0x331   : > { %p834_p11 = pnand %p833_p0, %p827_p6 }
 0x333   : > { %837 = shalt.err (!%p834_p11)
}
 0x334   : > { %621 = dma.vmem_to_hbm [thread:$0]  (%p637_p3), %s458_s23, 16, %s1206_s6, [#allocation6]  }
 0x335   : > { %891 = dma.done.wait (%p637_p3), [#allocation7], 16  }
 0x336   : > { %893 = vsyncadd (%p637_p3), [#allocation7], 4294967280 }
 0x337   : > { %895 = dma.done.wait (%p637_p3), [#allocation6], 16  }
 0x338   : > { %897 = vsyncadd (%p637_p3), [#allocation6], 4294967280 }
 0x339   : > { %469 = sfence }
 0x33a PF: > { %s29_s30 = sadd.s32 1, %s928_s30   ;;  %s1220_s2 = sld [smem:[#allocation18_spill]] }
 0x33b   : > { %p26_p10 = scmp.ge.s32.totalorder %s29_s30, 10   ;;  %s1221_s8 = sld [smem:[#allocation19_spill]] }
 0x33c   : > { %s1222_s24 = smov %s904_s25  ;;  %s1223_s25 = smov %s908_s26 }
 0x33d   : > { %s1224_s26 = smov %s1050_s19  ;;  %s1225_s27 = smov %s920_s0 }
 0x33e   : > { %s1226_s28 = smov %s924_s29  ;;  %28 = sbr.rel (!%p26_p10) target bundleno = 16 (0x10), region = 120 }
 0x340   : > { %s1227_s0 = smov %s1220_s2 }
 0x341   : > { %s1228_s29 = smov %s1221_s8 }
 0x343   :  { %475 = vsyncpa [#allocation5], 1 }
 0x344   :  { %477 = vsyncpa [#allocation5 + $0x1], 1 }
 0x345   :  { %478 = vsyncpa [#allocation9], 1 }
 0x346   :  { %480 = vsyncpa [#allocation9 + $0x1], 1 }
 0x347   :  { %481 = vsyncpa [#allocation6], 1 }
 0x348   :  { %483 = vsyncpa [#allocation6 + $0x1], 1 }
 0x349   :  { %484 = vsyncpa [#allocation7], 1 }
 0x34a   :  { %486 = vsyncpa [#allocation7 + $0x1], 1 }

</bundles_post_ra>
